<compile_context>
chip_gen: v5e
topology: v5e:2x2
jax: 0.10.0
libtpu: 0.0.40
codegen_flags: <defaults>
</compile_context>

<pallas_src>
import functools

import jax
import jax.numpy as jnp
from jax import lax
from jax.experimental import pallas as pl
from jax.experimental.pallas import tpu as pltpu


CHUNK = 512       # in-kernel lane chunk: bounds vreg live ranges per iteration
MAX_TILE = 4096   # max lanes per grid step (x tile = 8*MAX_TILE bytes -> trivial VMEM)

# Packed parameter block layout: a single zero-padded (48, 128) f32 tile.
#   rows  0:16, cols  0:2   -> W1   (16, 2)
#   rows  0:16, col   2     -> b1   (16, 1)
#   rows 16:48, cols  0:16  -> W2   (32, 16)
#   rows 16:48, col  16     -> b2   (32, 1)
#   rows 16:48, col  17     -> W3^T (32, 1)
#   row  16,    col  18     -> b3   (1, 1)
P_ROWS, P_COLS = 48, 128


def pack_params(params):
    blk = jnp.zeros((P_ROWS, P_COLS), jnp.float32)
    blk = blk.at[0:16, 0:2].set(params["w1"].astype(jnp.float32))
    blk = blk.at[0:16, 2:3].set(params["b1"].astype(jnp.float32))
    blk = blk.at[16:48, 0:16].set(params["w2"].astype(jnp.float32))
    blk = blk.at[16:48, 16:17].set(params["b2"].astype(jnp.float32))
    blk = blk.at[16:48, 17:18].set(params["w3t"].astype(jnp.float32))
    blk = blk.at[16:17, 18:19].set(params["b3"].astype(jnp.float32))
    return blk


def mlp_kernel(x_ref, p_ref, o_ref):
    """Fused 3-layer MLP.  x_ref: (2, tn), p_ref: (48, 128), o_ref: (1, tn)."""
    # Static slices of the single packed parameter block (loaded once per grid step).
    w1 = p_ref[0:16, 0:2]        # (16, 2)
    b1 = p_ref[0:16, 2:3]        # (16, 1)
    w2 = p_ref[16:48, 0:16]      # (32, 16)
    b2 = p_ref[16:48, 16:17]     # (32, 1)
    w3 = p_ref[16:48, 17:18]     # (32, 1)  == W3^T
    b3 = p_ref[16:17, 18:19]     # (1, 1)

    n_chunks = x_ref.shape[1] // CHUNK  # static

    def body(c, carry):
        j = pl.multiple_of(c * CHUNK, CHUNK)
        x = x_ref[:, pl.ds(j, CHUNK)]                                    # (2, CHUNK)

        # Layer 1 (K=2): two broadcast FMAs on the VPU, bias + ReLU fused.
        h1 = jnp.maximum(
            w1[:, 0:1] * x[0:1, :] + w1[:, 1:2] * x[1:2, :] + b1, 0.0
        )                                                                # (16, CHUNK)

        # Layer 2 (16 -> 32): the only MXU matmul; batch fills the lanes.
        h2 = jnp.dot(w2, h1, preferred_element_type=jnp.float32)        # (32, CHUNK)
        h2 = jnp.maximum(h2 + b2, 0.0)

        # Layer 3 (out width 1): elementwise multiply + cross-sublane reduce.
        out = jnp.sum(w3 * h2, axis=0, keepdims=True) + b3              # (1, CHUNK)
        o_ref[:, pl.ds(j, CHUNK)] = out.astype(o_ref.dtype)
        return carry

    lax.fori_loop(0, n_chunks, body, 0, unroll=True)


def choose_tile(n):
    """Lanes per grid step: whole (chunk-padded) batch if small, else MAX_TILE."""
    n_chunked = max(int(pl.cdiv(n, CHUNK)), 1) * CHUNK
    return int(min(n_chunked, MAX_TILE))


def prepare_points(x, tn):
    """(N, 2) -> lane-major, zero-padded (2, n_pad). Do this ONCE per dataset."""
    n = x.shape[0]
    n_blocks = max(int(pl.cdiv(n, tn)), 1)
    n_pad = n_blocks * tn
    x_t = x.astype(jnp.float32).T                     # (2, N): contiguous feature rows
    if n_pad != n:
        x_t = jnp.pad(x_t, ((0, 0), (0, n_pad - n)))  # zero tail; sliced off at the end
    return x_t


@functools.partial(jax.jit, static_argnames=("tn",))
def forward_lane_major(x_t, packed, *, tn):
    """x_t: (2, n_pad) with n_pad % tn == 0, packed: (48, 128). Returns (1, n_pad)."""
    n_pad = x_t.shape[1]
    n_blocks = n_pad // tn
    return pl.pallas_call(
        mlp_kernel,
        out_shape=jax.ShapeDtypeStruct((1, n_pad), jnp.float32),
        grid_spec=pltpu.PrefetchScalarGridSpec(
            num_scalar_prefetch=0,
            grid=(n_blocks,),
            in_specs=[
                pl.BlockSpec((2, tn), lambda i: (0, i)),           # lane-dense batch tile
                pl.BlockSpec((P_ROWS, P_COLS), lambda i: (0, 0)),  # one packed param block
            ],
            out_specs=pl.BlockSpec((1, tn), lambda i: (0, i)),
        ),
        compiler_params=pltpu.CompilerParams(
            dimension_semantics=("arbitrary",),  # grid steps are independent; no dual-TC claim
        ),
    )(x_t, packed)


def network_forward(x, params, *, tn=None):
    """Convenience wrapper: x (N, 2) -> (N, 1). Training loops should instead call
    prepare_points/pack_params once and reuse forward_lane_major per step."""
    n = x.shape[0]
    if tn is None:
        tn = choose_tile(n)
    x_t = prepare_points(x, tn)
    packed = pack_params(params)
    out_t = forward_lane_major(x_t, packed, tn=tn)
    return out_t[:, :n].T                             # (N, 1)


def init_params(key):
    """PyTorch nn.Linear-style init; weights (out_f, in_f), biases as columns."""
    def linear(k, fan_in, fan_out):
        kw, kb = jax.random.split(k)
        bound = 1.0 / jnp.sqrt(fan_in)
        w = jax.random.uniform(kw, (fan_out, fan_in), jnp.float32, -bound, bound)
        b = jax.random.uniform(kb, (fan_out, 1), jnp.float32, -bound, bound)
        return w, b

    k1, k2, k3 = jax.random.split(key, 3)
    w1, b1 = linear(k1, 2, 16)
    w2, b2 = linear(k2, 16, 32)
    w3, b3 = linear(k3, 32, 1)
    return {"w1": w1, "b1": b1, "w2": w2, "b2": b2, "w3t": w3.T, "b3": b3}


def reference_forward(x, p):
    dot = lambda a, b: jnp.dot(a, b, precision=jax.lax.Precision.HIGHEST)
    h1 = jnp.maximum(dot(x, p["w1"].T) + p["b1"].T, 0.0)
    h2 = jnp.maximum(dot(h1, p["w2"].T) + p["b2"].T, 0.0)
    return dot(h2, p["w3t"]) + p["b3"]


if __name__ == "__main__":
    key = jax.random.PRNGKey(0)
    kx, kp = jax.random.split(key)

    # Batch of (t, x) collocation points for the Burgers PINN.
    # N=1024 -> a single grid step (tn=1024) with two unrolled 512-lane chunks in-kernel.
    N = 1024
    x = jax.random.uniform(kx, (N, 2), jnp.float32, -1.0, 1.0)
    params = init_params(kp)

    out = network_forward(x, params)
    out = jax.block_until_ready(out)

    ref = reference_forward(x, params)
    assert out.shape == (N, 1)
    assert jnp.allclose(out, ref, atol=1e-5, rtol=1e-5), "mismatch vs JAX reference"

    print("KERNEL_OK")
</pallas_src>

<mosaic_0001>
module attributes {stable_mosaic.version = 11 : i64} {
  func.func @mlp_kernel(%arg0: i32, %arg1: memref<2x1024xf32, #tpu.memory_space<vmem>>, %arg2: memref<48x128xf32, #tpu.memory_space<vmem>>, %arg3: memref<1x1024xf32, #tpu.memory_space<vmem>>) attributes {dimension_semantics = [#tpu.dimension_semantics<arbitrary>], iteration_bounds = array<i64: 1>, scalar_prefetch = 0 : i64, scratch_operands = 0 : i64, tpu.core_type = #tpu.core_type<tc>, window_params = [{transform_indices = @transform_0, window_bounds = array<i64: 2, 1024>}, {pipeline_mode = #tpu.pipeline_mode<synchronous>, transform_indices = @transform_1, window_bounds = array<i64: 48, 128>}, {transform_indices = @transform_2, window_bounds = array<i64: 1, 1024>}]} {
    %c0 = arith.constant 0 : index
    %c0_0 = arith.constant 0 : index
    %0 = vector.load %arg2[%c0, %c0_0] : memref<48x128xf32, #tpu.memory_space<vmem>>, vector<16x2xf32>
    %c0_1 = arith.constant 0 : index
    %c2 = arith.constant 2 : index
    %1 = vector.load %arg2[%c0_1, %c2] : memref<48x128xf32, #tpu.memory_space<vmem>>, vector<16x1xf32>
    %c16 = arith.constant 16 : index
    %c0_2 = arith.constant 0 : index
    %2 = vector.load %arg2[%c16, %c0_2] : memref<48x128xf32, #tpu.memory_space<vmem>>, vector<32x16xf32>
    %c16_3 = arith.constant 16 : index
    %c16_4 = arith.constant 16 : index
    %3 = vector.load %arg2[%c16_3, %c16_4] : memref<48x128xf32, #tpu.memory_space<vmem>>, vector<32x1xf32>
    %c16_5 = arith.constant 16 : index
    %c17 = arith.constant 17 : index
    %4 = vector.load %arg2[%c16_5, %c17] : memref<48x128xf32, #tpu.memory_space<vmem>>, vector<32x1xf32>
    %c16_6 = arith.constant 16 : index
    %c18 = arith.constant 18 : index
    %5 = vector.load %arg2[%c16_6, %c18] : memref<48x128xf32, #tpu.memory_space<vmem>>, vector<1x1xf32>
    %c0_i32 = arith.constant 0 : i32
    %c512_i32 = arith.constant 512 : i32
    %6 = arith.muli %c0_i32, %c512_i32 : i32
    %7 = tpu.assume_multiple %6, 512 : i32
    %c0_7 = arith.constant 0 : index
    %8 = arith.index_cast %7 : i32 to index
    %9 = vector.load %arg1[%c0_7, %8] : memref<2x1024xf32, #tpu.memory_space<vmem>>, vector<2x512xf32>
    %10 = vector.extract_strided_slice %0 {offsets = [0, 0], sizes = [16, 1], strides = [1, 1]} : vector<16x2xf32> to vector<16x1xf32>
    %11 = vector.extract_strided_slice %9 {offsets = [0, 0], sizes = [1, 512], strides = [1, 1]} : vector<2x512xf32> to vector<1x512xf32>
    %12 = vector.broadcast %10 : vector<16x1xf32> to vector<16x512xf32>
    %13 = vector.broadcast %11 : vector<1x512xf32> to vector<16x512xf32>
    %14 = arith.mulf %12, %13 : vector<16x512xf32>
    %15 = vector.extract_strided_slice %0 {offsets = [0, 1], sizes = [16, 1], strides = [1, 1]} : vector<16x2xf32> to vector<16x1xf32>
    %16 = vector.extract_strided_slice %9 {offsets = [1, 0], sizes = [1, 512], strides = [1, 1]} : vector<2x512xf32> to vector<1x512xf32>
    %17 = vector.broadcast %15 : vector<16x1xf32> to vector<16x512xf32>
    %18 = vector.broadcast %16 : vector<1x512xf32> to vector<16x512xf32>
    %19 = arith.mulf %17, %18 : vector<16x512xf32>
    %20 = arith.addf %14, %19 : vector<16x512xf32>
    %21 = vector.broadcast %1 : vector<16x1xf32> to vector<16x512xf32>
    %22 = arith.addf %20, %21 : vector<16x512xf32>
    %cst = arith.constant 0.000000e+00 : f32
    %23 = vector.broadcast %cst : f32 to vector<16x512xf32>
    %24 = arith.maximumf %22, %23 : vector<16x512xf32>
    %cst_8 = arith.constant dense<0.000000e+00> : vector<32x512xf32>
    %25 = tpu.matmul %2, %24, %cst_8 {dimension_numbers = #tpu.dot_dimension_numbers<[1], [0], [0], [1], [0, 0, 1, 1], [], []>} : vector<32x16xf32>, vector<16x512xf32>, vector<32x512xf32> -> vector<32x512xf32>
    %26 = vector.broadcast %3 : vector<32x1xf32> to vector<32x512xf32>
    %27 = arith.addf %25, %26 : vector<32x512xf32>
    %cst_9 = arith.constant 0.000000e+00 : f32
    %28 = vector.broadcast %cst_9 : f32 to vector<32x512xf32>
    %29 = arith.maximumf %27, %28 : vector<32x512xf32>
    %30 = vector.broadcast %4 : vector<32x1xf32> to vector<32x512xf32>
    %31 = arith.mulf %30, %29 : vector<32x512xf32>
    %cst_10 = arith.constant dense<0.000000e+00> : vector<512xf32>
    %32 = vector.multi_reduction <add>, %31, %cst_10 [0] : vector<32x512xf32> to vector<512xf32>
    %33 = vector.shape_cast %32 : vector<512xf32> to vector<1x512xf32>
    %34 = vector.broadcast %5 : vector<1x1xf32> to vector<1x512xf32>
    %35 = arith.addf %33, %34 : vector<1x512xf32>
    %c0_11 = arith.constant 0 : index
    %36 = arith.index_cast %7 : i32 to index
    %37 = vector.load %arg3[%c0_11, %36] : memref<1x1024xf32, #tpu.memory_space<vmem>>, vector<1x512xf32>
    tpu.vector_store %arg3[%c0_11, %36], %35 {strides = array<i32>} : memref<1x1024xf32, #tpu.memory_space<vmem>>, vector<1x512xf32>,
    %c1_i32 = arith.constant 1 : i32
    %c512_i32_12 = arith.constant 512 : i32
    %38 = arith.muli %c1_i32, %c512_i32_12 : i32
    %39 = tpu.assume_multiple %38, 512 : i32
    %c0_13 = arith.constant 0 : index
    %40 = arith.index_cast %39 : i32 to index
    %41 = vector.load %arg1[%c0_13, %40] : memref<2x1024xf32, #tpu.memory_space<vmem>>, vector<2x512xf32>
    %42 = vector.extract_strided_slice %0 {offsets = [0, 0], sizes = [16, 1], strides = [1, 1]} : vector<16x2xf32> to vector<16x1xf32>
    %43 = vector.extract_strided_slice %41 {offsets = [0, 0], sizes = [1, 512], strides = [1, 1]} : vector<2x512xf32> to vector<1x512xf32>
    %44 = vector.broadcast %42 : vector<16x1xf32> to vector<16x512xf32>
    %45 = vector.broadcast %43 : vector<1x512xf32> to vector<16x512xf32>
    %46 = arith.mulf %44, %45 : vector<16x512xf32>
    %47 = vector.extract_strided_slice %0 {offsets = [0, 1], sizes = [16, 1], strides = [1, 1]} : vector<16x2xf32> to vector<16x1xf32>
    %48 = vector.extract_strided_slice %41 {offsets = [1, 0], sizes = [1, 512], strides = [1, 1]} : vector<2x512xf32> to vector<1x512xf32>
    %49 = vector.broadcast %47 : vector<16x1xf32> to vector<16x512xf32>
    %50 = vector.broadcast %48 : vector<1x512xf32> to vector<16x512xf32>
    %51 = arith.mulf %49, %50 : vector<16x512xf32>
    %52 = arith.addf %46, %51 : vector<16x512xf32>
    %53 = vector.broadcast %1 : vector<16x1xf32> to vector<16x512xf32>
    %54 = arith.addf %52, %53 : vector<16x512xf32>
    %cst_14 = arith.constant 0.000000e+00 : f32
    %55 = vector.broadcast %cst_14 : f32 to vector<16x512xf32>
    %56 = arith.maximumf %54, %55 : vector<16x512xf32>
    %cst_15 = arith.constant dense<0.000000e+00> : vector<32x512xf32>
    %57 = tpu.matmul %2, %56, %cst_15 {dimension_numbers = #tpu.dot_dimension_numbers<[1], [0], [0], [1], [0, 0, 1, 1], [], []>} : vector<32x16xf32>, vector<16x512xf32>, vector<32x512xf32> -> vector<32x512xf32>
    %58 = vector.broadcast %3 : vector<32x1xf32> to vector<32x512xf32>
    %59 = arith.addf %57, %58 : vector<32x512xf32>
    %cst_16 = arith.constant 0.000000e+00 : f32
    %60 = vector.broadcast %cst_16 : f32 to vector<32x512xf32>
    %61 = arith.maximumf %59, %60 : vector<32x512xf32>
    %62 = vector.broadcast %4 : vector<32x1xf32> to vector<32x512xf32>
    %63 = arith.mulf %62, %61 : vector<32x512xf32>
    %cst_17 = arith.constant dense<0.000000e+00> : vector<512xf32>
    %64 = vector.multi_reduction <add>, %63, %cst_17 [0] : vector<32x512xf32> to vector<512xf32>
    %65 = vector.shape_cast %64 : vector<512xf32> to vector<1x512xf32>
    %66 = vector.broadcast %5 : vector<1x1xf32> to vector<1x512xf32>
    %67 = arith.addf %65, %66 : vector<1x512xf32>
    %c0_18 = arith.constant 0 : index
    %68 = arith.index_cast %39 : i32 to index
    %69 = vector.load %arg3[%c0_18, %68] : memref<1x1024xf32, #tpu.memory_space<vmem>>, vector<1x512xf32>
    tpu.vector_store %arg3[%c0_18, %68], %67 {strides = array<i32>} : memref<1x1024xf32, #tpu.memory_space<vmem>>, vector<1x512xf32>,
    %c2_i32 = arith.constant 2 : i32
    return
  }
  func.func @transform_0(%arg0: i32) -> (i32, i32) {
    %c0_i32 = arith.constant 0 : i32
    %c0_i32_0 = arith.constant 0 : i32
    return %c0_i32, %arg0 : i32, i32
  }
  func.func @transform_1(%arg0: i32) -> (i32, i32) {
    %c0_i32 = arith.constant 0 : i32
    %c0_i32_0 = arith.constant 0 : i32
    %c0_i32_1 = arith.constant 0 : i32
    return %c0_i32, %c0_i32_0 : i32, i32
  }
  func.func @transform_2(%arg0: i32) -> (i32, i32) {
    %c0_i32 = arith.constant 0 : i32
    %c0_i32_0 = arith.constant 0 : i32
    return %c0_i32, %arg0 : i32, i32
  }
}

</mosaic_0001>

<bundles_post_ra>
// kernel: forward_lane_major.1
= control target key start
LH: loop header
LB: loop body
LE: loop exit
PB: predicated region body
PF: predicated region fallthrough
CT: control target
= control target key end

     0   :  { %7 = vsyncpa [#allocation3], 0  ;;  %s1112_s0 = inlined_call_operand.hbm [shape: f32[2,1024], index: 0, kind: input, shape index: {}]   ;;  %s1113_s1 = inlined_call_operand.hbm [shape: f32[48,128], index: 1, kind: input, shape index: {}]   ;;  %s1114_s2 = inlined_call_operand.hbm [shape: f32[1,1024], index: 2, kind: output, shape index: {}]  }
   0x1   :  { %8 = vsyncpa [#allocation6], 0 }
   0x2   :  { %9 = vsyncpa [#allocation4], 0  ;;  %s15_s11 = sshll.u32 %s1112_s0, 4  ;;  %s818_s12 = smov [#allocation2]   ;;  %s16_s11 = int_to_ptr.hbm [resolvable:$true] %s15_s11 }
   0x3   :  { %s17_s13 = sshll.u32 %s818_s12, 4  ;;  %s25_s16 = sshll.u32 %s1113_s1, 4  ;;  %s18_s13 = int_to_ptr.vmem [resolvable:$true] %s17_s13  ;;  %s26_s16 = int_to_ptr.hbm [resolvable:$true] %s25_s16 }
   0x4   :  { %20 = dma.hbm_to_vmem [thread:$0]  %s16_s11, 256, %s18_s13, [#allocation3]  }
   0x5   :  { %s819_s17 = smov [#allocation5]   ;;  %s820_s19 = smov 128  }
   0x6   :  { %s27_s18 = sshll.u32 %s819_s17, 4  ;;  %s821_s20 = smov 8   ;;  %s28_s18 = int_to_ptr.vmem [resolvable:$true] %s27_s18 }
   0x7   :  { %33 = dma.hbm_to_vmem [thread:$0]  %s26_s16, 768, %s28_s18, [#allocation6], %s820_s19, %s820_s19, %s821_s20  }
   0x8   :  { %812 = dma.done.wait [#allocation3], 256  }
   0x9   :  { %813 = vsyncadd [#allocation3], 4294967040 }
   0xa   :  { %814 = dma.done.wait [#allocation6], 768  }
   0xb   :  { %815 = vsyncadd [#allocation6], 4294966528  ;;  %v822_v0 = vmov 0   ;;  %v823_v1 = vmov 2   ;;  %v43_v2 = vld [vmem:[#allocation5 + $0x8] sm:$0xff]  ;;  %v42_v3 = vld [vmem:[#allocation5] sm:$0xff] }
   0xc   :  { %729 = vset.pattern.permute.xlu1 %v822_v0  ;;  %727 = vset.pattern.permute.xlu0 %v822_v0  ;;  %v824_v4 = vmov 1   ;;  %v49_v5 = vld [vmem:[#allocation2] sm:$0xff]  ;;  %v399_v6 = vld [vmem:[#allocation2 + $0x8] sm:$0xff]  ;;  %v825_v44 = vmov 16   ;;  %v870_v45 = vld [vmem:[#allocation5 + $0x20] sm:$0xff]  ;;  %vm161_vm0 = vcmask 130048  }
   0xd   :  { %731 = vset.pattern.permute.xlu2 %v823_v1  ;;  %57 = vperm.xlu0 %727, %v43_v2   ;;  %v61_v7 = vperm.slane %v49_v5, 0  ;;  %v62_v8 = vperm.slane %v49_v5, 2  ;;  %v63_v9 = vperm.slane %v49_v5, 4  ;;  %v64_v10 = vperm.slane %v49_v5, 6  ;;  %v864_v41 = vld [vmem:[#allocation5 + $0x10] sm:$0xff]  ;;  %v883_v54 = vld [vmem:[#allocation5 + $0x18] sm:$0xff] }
   0xe   :  { %52 = vperm.xlu1 %729, %v42_v3   ;;  %122 = vperm.xlu2 %731, %v43_v2   ;;  %v401_v11 = vperm.slane %v399_v6, 0  ;;  %v402_v12 = vperm.slane %v399_v6, 2  ;;  %v89_v15 = vperm.slane %v49_v5, 1  ;;  %v90_v16 = vperm.slane %v49_v5, 3  ;;  %s828_s0 = smov [#allocation7]   ;;  %s673_s23 = sshll.u32 %s1114_s2, 4  ;;  %s674_s23 = int_to_ptr.hbm [resolvable:$true] %s673_s23 }
   0xf   :  { %v403_v17 = vperm.slane %v399_v6, 4  ;;  %v404_v18 = vperm.slane %v399_v6, 6  ;;  %v69_v19 = vperm.slane %v61_v7, 0  ;;  %v91_v20 = vperm.slane %v49_v5, 5  ;;  %s671_s1 = sshll.u32 %s828_s0, 4  ;;  %s672_s1 = int_to_ptr.vmem [resolvable:$true] %s671_s1 }
  0x10   :  { %v92_v21 = vperm.slane %v49_v5, 7  ;;  %v421_v22 = vperm.slane %v399_v6, 1  ;;  %v70_v23 = vperm.slane %v62_v8, 0  ;;  %v71_v24 = vperm.slane %v63_v9, 0  ;;  %v895_v8 = vld [vmem:[#allocation5 + $0x28] sm:$0xff] }
  0x11   :  { %v422_v25 = vperm.slane %v399_v6, 3  ;;  %v423_v26 = vperm.slane %v399_v6, 5  ;;  %v72_v27 = vperm.slane %v64_v10, 0  ;;  %v852_v28 = vperm.slane %v401_v11, 0 }
  0x12   :  { %v854_v29 = vperm.slane %v402_v12, 0  ;;  %v424_v30 = vperm.slane %v399_v6, 7  ;;  %v97_v32 = vperm.slane %v89_v15, 1  ;;  %v98_v33 = vperm.slane %v90_v16, 1 }
  0x13   :  { %v858_v34 = vperm.slane %v403_v17, 0  ;;  %v860_v35 = vperm.slane %v404_v18, 0  ;;  %v99_v36 = vperm.slane %v91_v20, 1  ;;  %v100_v37 = vperm.slane %v92_v21, 1 }
  0x14   :  { %v862_v38 = vperm.slane %v421_v22, 1  ;;  %v866_v42 = vperm.slane %v422_v25, 1  ;;  %v868_v43 = vperm.slane %v423_v26, 1  ;;  %v873_v49 = vperm.slane %v424_v30, 1 }
  0x15   :  { %728 = vset.pattern.permute.xlu0 %v824_v4  ;;  %vm386_vm1 = vcmask 1040384   ;;  %vm388_vm2 = vcmask 1042434   ;;  %vm390_vm3 = vcmask 1041408  }
  0x16   :  { %730 = vset.pattern.permute.xlu1 %v824_v4  ;;  %86 = vperm.xlu0 %728, %v43_v2  }
  0x17   :  { %82 = vperm.xlu1 %730, %v42_v3   ;;  %118 = vperm.xlu2 %731, %v42_v3  }
  0x1e   :  { %734 = vset.pattern.permute.xlu0 %v825_v44 }
  0x1f   :  { %732 = vset.pattern.permute.xlu1 %v825_v44  ;;  %153 = vperm.xlu0 %734, %v870_v45  }
  0x20   :  { %143 = vperm.xlu1 %732, %v864_v41   ;;  %733 = vset.pattern.permute.xlu2 %v825_v44 }
  0x21   :  { %148 = vperm.xlu2 %733, %v883_v54  }
  0x28   :  { %158 = vperm.xlu1 %732, %v895_v8  }
  0x68   :  { %v856_v31 = vpop.permute.xlu2 %122 }
  0x7f   :  { %v58_v13 = vpop.permute.xlu0 %57 }
  0x80   :  { %v850_v14 = vpop.permute.xlu1 %52  ;;  %v77_v39 = vmul.f32 %v69_v19, %v58_v13  ;;  %v78_v40 = vmul.f32 %v70_v23, %v58_v13  ;;  %v79_v46 = vmul.f32 %v71_v24, %v58_v13  ;;  %v80_v47 = vmul.f32 %v72_v27, %v58_v13 }
  0x81   :  { %v73_v48 = vmul.f32 %v69_v19, %v850_v14  ;;  %v74_v50 = vmul.f32 %v70_v23, %v850_v14  ;;  %v75_v51 = vmul.f32 %v71_v24, %v850_v14  ;;  %v76_v52 = vmul.f32 %v72_v27, %v850_v14 }
  0x82   :  { %v881_v53 = vmul.f32 %v852_v28, %v58_v13  ;;  %v418_v57 = vmul.f32 %v854_v29, %v58_v13  ;;  %v419_v58 = vmul.f32 %v858_v34, %v58_v13  ;;  %v420_v59 = vmul.f32 %v860_v35, %v58_v13  ;;  %v897_v13 = vpop.permute.xlu2 %118 }
  0x83   :  { %v826_v27 = vmov 17  }
  0x84   :  { %737 = vset.pattern.permute.xlu0 %v826_v27  ;;  %735 = vset.pattern.permute.xlu2 %v826_v27 }
  0x85   :  { %315 = vperm.xlu0 %737, %v895_v8   ;;  %736 = vset.pattern.permute.xlu1 %v826_v27 }
  0x86   :  { %303 = vperm.xlu2 %735, %v864_v41   ;;  %307 = vperm.xlu1 %736, %v883_v54  }
  0x88   :  { %v87_v55 = vpop.permute.xlu0 %86 }
  0x89   :  { %v885_v56 = vpop.permute.xlu1 %82  ;;  %v105_v60 = vmul.f32 %v97_v32, %v87_v55  ;;  %v106_v61 = vmul.f32 %v98_v33, %v87_v55  ;;  %v107_v62 = vmul.f32 %v99_v36, %v87_v55  ;;  %v108_v63 = vmul.f32 %v100_v37, %v87_v55 }
  0x8a   :  { %v101_v0 = vmul.f32 %v97_v32, %v885_v56  ;;  %v102_v1 = vmul.f32 %v98_v33, %v885_v56  ;;  %v103_v2 = vmul.f32 %v99_v36, %v885_v56  ;;  %v104_v3 = vmul.f32 %v100_v37, %v885_v56 }
  0x8b   :  { %v113_v4 = vadd.f32 %v105_v60, %v77_v39  ;;  %v114_v5 = vadd.f32 %v106_v61, %v78_v40  ;;  %v115_v6 = vadd.f32 %v107_v62, %v79_v46  ;;  %v116_v7 = vadd.f32 %v108_v63, %v80_v47 }
  0x8c   :  { %v109_v9 = vadd.f32 %v101_v0, %v73_v48  ;;  %v110_v10 = vadd.f32 %v102_v1, %v74_v50  ;;  %v111_v11 = vadd.f32 %v103_v2, %v75_v51  ;;  %v112_v12 = vadd.f32 %v104_v3, %v76_v52 }
  0x8d   :  { %v129_v15 = vadd.f32 %v856_v31, %v113_v4  ;;  %v130_v16 = vadd.f32 %v856_v31, %v114_v5  ;;  %v131_v17 = vadd.f32 %v856_v31, %v115_v6  ;;  %v132_v18 = vadd.f32 %v856_v31, %v116_v7 }
  0x8e   :  { %v125_v19 = vadd.f32 %v897_v13, %v109_v9  ;;  %v126_v20 = vadd.f32 %v897_v13, %v110_v10  ;;  %v127_v21 = vadd.f32 %v897_v13, %v111_v11  ;;  %v128_v22 = vadd.f32 %v897_v13, %v112_v12  ;;  %311 = vperm.xlu2 %735, %v870_v45   ;;  %v1007_v10 = vpop.permute.xlu2 %148 }
  0x8f   :  { %v137_v23 = vmax.f32 %v129_v15, 0.0  ;;  %v138_v24 = vmax.f32 %v130_v16, 0.0  ;;  %v139_v25 = vmax.f32 %v131_v17, 0.0  ;;  %v140_v26 = vmax.f32 %v132_v18, 0.0 }
  0x90   :  { %v133_v30 = vmax.f32 %v125_v19, 0.0  ;;  %v134_v32 = vmax.f32 %v126_v20, 0.0  ;;  %v413_v33 = vmul.f32 %v852_v28, %v850_v14  ;;  %v414_v36 = vmul.f32 %v854_v29, %v850_v14 }
  0x91   :  { %184 = vmatpush.msra.mxu0 %v137_v23  ;;  %213 = vmatpush.msra.mxu1 %v138_v24  ;;  %v135_v37 = vmax.f32 %v127_v21, 0.0  ;;  %v437_v39 = vmul.f32 %v862_v38, %v87_v55  ;;  %v438_v40 = vmul.f32 %v866_v42, %v87_v55  ;;  %v439_v44 = vmul.f32 %v868_v43, %v87_v55  ;;  %v1013_v17 = vpop.permute.xlu0 %153 }
  0x92   :  { %242 = vmatpush.msra.mxu2 %v139_v25  ;;  %271 = vmatpush.msra.mxu3 %v140_v26  ;;  %v136_v46 = vmax.f32 %v128_v22, 0.0  ;;  %v440_v28 = vmul.f32 %v873_v49, %v87_v55  ;;  %v433_v29 = vmul.f32 %v862_v38, %v885_v56  ;;  %v434_v47 = vmul.f32 %v866_v42, %v885_v56 }
  0x93   :  { %185 = vmatpush.msra.mxu0 %v133_v30  ;;  %214 = vmatpush.msra.mxu1 %v134_v32  ;;  %v445_v48 = vadd.f32 %v437_v39, %v881_v53  ;;  %v446_v50 = vadd.f32 %v438_v40, %v418_v57  ;;  %v447_v51 = vadd.f32 %v439_v44, %v419_v58 }
  0x94   :  { %243 = vmatpush.msra.mxu2 %v135_v37  ;;  %272 = vmatpush.msra.mxu3 %v136_v46  ;;  %v448_v52 = vadd.f32 %v440_v28, %v420_v59  ;;  %v441_v60 = vadd.f32 %v433_v29, %v413_v33  ;;  %v442_v61 = vadd.f32 %v434_v47, %v414_v36 }
  0x95   :  { %684 = vmatmul.msk.f32.vlgmr.msra.gmra.mxu0 %vm161_vm0, %v864_v41  ;;  %688 = vmatmul.msk.f32.vlgmr.msra.gmra.mxu1 %vm161_vm0, %v864_v41  ;;  %v453_v38 = vadd.f32 %v445_v48, %v856_v31  ;;  %v454_v42 = vadd.f32 %v446_v50, %v856_v31  ;;  %v455_v55 = vadd.f32 %v447_v51, %v856_v31 }
  0x96   :  { %692 = vmatmul.msk.f32.vlgmr.msra.gmra.mxu2 %vm161_vm0, %v864_v41  ;;  %696 = vmatmul.msk.f32.vlgmr.msra.gmra.mxu3 %vm161_vm0, %v864_v41  ;;  %v456_v53 = vadd.f32 %v448_v52, %v856_v31  ;;  %v449_v57 = vadd.f32 %v441_v60, %v897_v13  ;;  %v450_v58 = vadd.f32 %v442_v61, %v897_v13 }
  0x97   :  { %v461_v59 = vmax.f32 %v453_v38, 0.0  ;;  %v462_v62 = vmax.f32 %v454_v42, 0.0  ;;  %v415_v63 = vmul.f32 %v858_v34, %v850_v14  ;;  %v435_v0 = vmul.f32 %v868_v43, %v885_v56 }
  0x98   :  { %v463_v1 = vmax.f32 %v455_v55, 0.0  ;;  %v464_v2 = vmax.f32 %v456_v53, 0.0  ;;  %v416_v31 = vmul.f32 %v860_v35, %v850_v14  ;;  %v436_v3 = vmul.f32 %v873_v49, %v885_v56  ;;  %v48_v49 = vld [vmem:[#allocation5 + $0x10] sm:$0x1] }
  0x99   :  { %479 = vmatpush.msrb.mxu0 %v461_v59  ;;  %508 = vmatpush.msrb.mxu1 %v462_v62  ;;  %v457_v4 = vmax.f32 %v449_v57, 0.0  ;;  %v458_v34 = vmax.f32 %v450_v58, 0.0  ;;  %v443_v5 = vadd.f32 %v435_v0, %v415_v63  ;;  %v827_v56 = vmov 18  }
  0x9a   :  { %537 = vmatpush.msrb.mxu2 %v463_v1  ;;  %566 = vmatpush.msrb.mxu3 %v464_v2  ;;  %v444_v43 = vadd.f32 %v436_v3, %v416_v31 }
  0x9b   :  { %480 = vmatpush.msrb.mxu0 %v457_v4  ;;  %509 = vmatpush.msrb.mxu1 %v458_v34  ;;  %v451_v6 = vadd.f32 %v443_v5, %v897_v13 }
  0x9c   :  { %v452_v7 = vadd.f32 %v444_v43, %v897_v13  ;;  %738 = vset.pattern.permute.xlu1 %v827_v56  ;;  %739 = vset.pattern.permute.xlu0 %v827_v56 }
  0x9d   :  { %v459_v14 = vmax.f32 %v451_v6, 0.0  ;;  %685 = vmatmul.msk.f32.gmra.mxu0 %vm161_vm0, %v883_v54  ;;  %689 = vmatmul.msk.f32.gmra.mxu1 %vm161_vm0, %v883_v54 }
  0x9e   :  { %v460_v35 = vmax.f32 %v452_v7, 0.0  ;;  %693 = vmatmul.msk.f32.gmra.mxu2 %vm161_vm0, %v883_v54  ;;  %697 = vmatmul.msk.f32.gmra.mxu3 %vm161_vm0, %v883_v54 }
  0x9f   :  { %538 = vmatpush.msrb.mxu2 %v459_v14  ;;  %372 = vperm.xlu1 %738, %v48_v49  }
  0xa0   :  { %567 = vmatpush.msrb.mxu3 %v460_v35 }
  0xa5   :  { %686 = vmatmul.msk.f32.gmra.mxu0 %vm161_vm0, %v870_v45  ;;  %690 = vmatmul.msk.f32.gmra.mxu1 %vm161_vm0, %v870_v45 }
  0xa6   :  { %694 = vmatmul.msk.f32.gmra.mxu2 %vm161_vm0, %v870_v45  ;;  %698 = vmatmul.msk.f32.gmra.mxu3 %vm161_vm0, %v870_v45 }
  0xad   :  { %687 = vmatmul.msk.f32.gmra.mxu0 %vm161_vm0, %v895_v8  ;;  %691 = vmatmul.msk.f32.gmra.mxu1 %vm161_vm0, %v895_v8 }
  0xae   :  { %695 = vmatmul.msk.f32.gmra.mxu2 %vm161_vm0, %v895_v8  ;;  %699 = vmatmul.msk.f32.gmra.mxu3 %vm161_vm0, %v895_v8 }
  0xb5   :  { %700 = vmatmul.msk.f32.vlgmr.msrb.gmra.mxu0 %vm161_vm0, %v864_v41  ;;  %704 = vmatmul.msk.f32.vlgmr.msrb.gmra.mxu1 %vm161_vm0, %v864_v41 }
  0xb6   :  { %708 = vmatmul.msk.f32.vlgmr.msrb.gmra.mxu2 %vm161_vm0, %v864_v41  ;;  %712 = vmatmul.msk.f32.vlgmr.msrb.gmra.mxu3 %vm161_vm0, %v864_v41  ;;  %v1005_v41 = vpop.permute.xlu1 %143 }
  0xbd   :  { %701 = vmatmul.msk.f32.gmra.mxu0 %vm161_vm0, %v883_v54  ;;  %705 = vmatmul.msk.f32.gmra.mxu1 %vm161_vm0, %v883_v54 }
  0xbe   :  { %709 = vmatmul.msk.f32.gmra.mxu2 %vm161_vm0, %v883_v54  ;;  %713 = vmatmul.msk.f32.gmra.mxu3 %vm161_vm0, %v883_v54  ;;  %v1009_v15 = vpop.permute.xlu1 %158 }
  0xc5   :  { %702 = vmatmul.msk.f32.gmra.mxu0 %vm161_vm0, %v870_v45  ;;  %706 = vmatmul.msk.f32.gmra.mxu1 %vm161_vm0, %v870_v45 }
  0xc6   :  { %710 = vmatmul.msk.f32.gmra.mxu2 %vm161_vm0, %v870_v45  ;;  %714 = vmatmul.msk.f32.gmra.mxu3 %vm161_vm0, %v870_v45 }
  0xcd   :  { %703 = vmatmul.msk.f32.gmra.mxu0 %vm161_vm0, %v895_v8  ;;  %707 = vmatmul.msk.f32.gmra.mxu1 %vm161_vm0, %v895_v8 }
  0xce   :  { %711 = vmatmul.msk.f32.gmra.mxu2 %vm161_vm0, %v895_v8  ;;  %715 = vmatmul.msk.f32.gmra.mxu3 %vm161_vm0, %v895_v8 }
  0xe0   :  { %v1011_v16 = vpop.permute.xlu2 %303 }
  0xe8   :  { %v1027_v29 = vpop.permute.xlu2 %311 }
  0xf7   :  { %v1039_v2 = vpop.permute.xlu0 %315 }
  0xf8   :  { %v1021_v36 = vpop.permute.xlu1 %307 }
 0x112   :  { %v187_v54 = vpop.f32.mrf.mxu0  ;;  %v216_v9 = vpop.f32.mrf.mxu1 }
 0x113   :  { %v188_v18 = vadd.f32 %v187_v54, %v1005_v41  ;;  %v217_v22 = vadd.f32 %v216_v9, %v1005_v41 }
 0x115   :  { %v286_v27 = vmax.f32 %v188_v18, 0.0  ;;  %v287_v33 = vmax.f32 %v217_v22, 0.0 }
 0x117   :  { %v318_v47 = vmul.f32 %v1011_v16, %v286_v27  ;;  %v319_v60 = vmul.f32 %v1011_v16, %v287_v33 }
 0x119   :  { %v245_v11 = vpop.f32.mrf.mxu2  ;;  %v274_v45 = vpop.f32.mrf.mxu3 }
 0x11a   :  { %v190_v12 = vpop.f32.mrf.mxu0  ;;  %v219_v13 = vpop.f32.mrf.mxu1  ;;  %v246_v40 = vadd.f32 %v245_v11, %v1005_v41  ;;  %v275_v44 = vadd.f32 %v274_v45, %v1005_v41 }
 0x11b   :  { %v191_v8 = vadd.f32 %v190_v12, %v1007_v10  ;;  %v220_v19 = vadd.f32 %v219_v13, %v1007_v10 }
 0x11c   :  { %v288_v62 = vmax.f32 %v246_v40, 0.0  ;;  %v289_v63 = vmax.f32 %v275_v44, 0.0 }
 0x11d   :  { %v290_v30 = vmax.f32 %v191_v8, 0.0  ;;  %v291_v32 = vmax.f32 %v220_v19, 0.0 }
 0x11e   :  { %v320_v54 = vmul.f32 %v1011_v16, %v288_v62  ;;  %v321_v9 = vmul.f32 %v1011_v16, %v289_v63 }
 0x11f   :  { %v322_v48 = vmul.f32 %v1021_v36, %v290_v30  ;;  %v323_v50 = vmul.f32 %v1021_v36, %v291_v32 }
 0x121   :  { %v248_v20 = vpop.f32.mrf.mxu2  ;;  %v277_v21 = vpop.f32.mrf.mxu3  ;;  %v334_v31 = vadd.f32 %v322_v48, %v318_v47  ;;  %v343_v3 = vadd.f32 %v323_v50, %v319_v60 }
 0x122   :  { %v193_v23 = vpop.f32.mrf.mxu0  ;;  %v222_v24 = vpop.f32.mrf.mxu1  ;;  %v249_v46 = vadd.f32 %v248_v20, %v1007_v10  ;;  %v278_v28 = vadd.f32 %v277_v21, %v1007_v10 }
 0x123   :  { %v194_v25 = vadd.f32 %v193_v23, %v1013_v17  ;;  %v223_v26 = vadd.f32 %v222_v24, %v1013_v17 }
 0x124   :  { %v292_v0 = vmax.f32 %v249_v46, 0.0  ;;  %v293_v1 = vmax.f32 %v278_v28, 0.0 }
 0x125   :  { %v294_v37 = vmax.f32 %v194_v25, 0.0  ;;  %v295_v39 = vmax.f32 %v223_v26, 0.0 }
 0x126   :  { %v324_v49 = vmul.f32 %v1021_v36, %v292_v0  ;;  %v325_v56 = vmul.f32 %v1021_v36, %v293_v1 }
 0x127   :  { %v326_v53 = vmul.f32 %v1027_v29, %v294_v37  ;;  %v327_v57 = vmul.f32 %v1027_v29, %v295_v39 }
 0x128   :  { %v352_v25 = vadd.f32 %v324_v49, %v320_v54  ;;  %v361_v26 = vadd.f32 %v325_v56, %v321_v9 }
 0x129   :  { %v251_v51 = vpop.f32.mrf.mxu2  ;;  %v280_v52 = vpop.f32.mrf.mxu3  ;;  %v335_v6 = vadd.f32 %v334_v31, %v326_v53  ;;  %v344_v7 = vadd.f32 %v343_v3, %v327_v57 }
 0x12a   :  { %v252_v61 = vadd.f32 %v251_v51, %v1013_v17  ;;  %v281_v38 = vadd.f32 %v280_v52, %v1013_v17  ;;  %v196_v42 = vpop.f32.mrf.mxu0  ;;  %v225_v55 = vpop.f32.mrf.mxu1 }
 0x12b   :  { %v197_v58 = vadd.f32 %v196_v42, %v1009_v15  ;;  %v226_v59 = vadd.f32 %v225_v55, %v1009_v15  ;;  %v1055_v31 = vpop.permute.xlu1 %372 }
 0x12c   :  { %v296_v5 = vmax.f32 %v252_v61, 0.0  ;;  %v297_v43 = vmax.f32 %v281_v38, 0.0 }
 0x12d   :  { %v298_v4 = vmax.f32 %v197_v58, 0.0  ;;  %v299_v34 = vmax.f32 %v226_v59, 0.0 }
 0x12e   :  { %v328_v18 = vmul.f32 %v1027_v29, %v296_v5  ;;  %v329_v8 = vmul.f32 %v1027_v29, %v297_v43 }
 0x12f   :  { %v330_v14 = vmul.f32 %v1039_v2, %v298_v4  ;;  %v331_v35 = vmul.f32 %v1039_v2, %v299_v34 }
 0x130   :  { %v353_v37 = vadd.f32 %v352_v25, %v328_v18  ;;  %v362_v39 = vadd.f32 %v361_v26, %v329_v8 }
 0x131   :  { %v336_v11 = vadd.f32 %v335_v6, %v330_v14  ;;  %v345_v45 = vadd.f32 %v344_v7, %v331_v35  ;;  %v254_v12 = vpop.f32.mrf.mxu2  ;;  %v283_v13 = vpop.f32.mrf.mxu3 }
 0x132   :  { %v255_v19 = vadd.f32 %v254_v12, %v1009_v15  ;;  %v284_v20 = vadd.f32 %v283_v13, %v1009_v15  ;;  %v482_v21 = vpop.f32.mrf.mxu0  ;;  %v511_v22 = vpop.f32.mrf.mxu1 }
 0x133   :  { %v337_v23 = vrot.slane %v336_v11, 4  ;;  %v346_v24 = vrot.slane %v345_v45, 4  ;;  %v483_v59 = vadd.f32 %v482_v21, %v1005_v41  ;;  %v512_v62 = vadd.f32 %v511_v22, %v1005_v41 }
 0x134   :  { %v300_v27 = vmax.f32 %v255_v19, 0.0  ;;  %v301_v30 = vmax.f32 %v284_v20, 0.0  ;;  %v393_v20 = vlaneseq }
 0x135   :  { %v338_v32 = vadd.f32 %v337_v23, %v336_v11  ;;  %v347_v33 = vadd.f32 %v346_v24, %v345_v45  ;;  %v581_v5 = vmax.f32 %v483_v59, 0.0  ;;  %v582_v43 = vmax.f32 %v512_v62, 0.0 }
 0x136   :  { %v332_v40 = vmul.f32 %v1039_v2, %v300_v27  ;;  %v333_v44 = vmul.f32 %v1039_v2, %v301_v30  ;;  %vm1074_vm4 = vcmp.lt.s32.totalorder %v393_v20, 512 }
 0x137   :  { %v339_v46 = vrot.slane %v338_v32, 2  ;;  %v348_v28 = vrot.slane %v347_v33, 2  ;;  %v597_v19 = vmul.f32 %v581_v5, %v1011_v16  ;;  %v598_v21 = vmul.f32 %v582_v43, %v1011_v16 }
 0x138   :  { %v354_v47 = vadd.f32 %v353_v37, %v332_v40  ;;  %v363_v48 = vadd.f32 %v362_v39, %v333_v44 }
 0x139   :  { %v540_v50 = vpop.f32.mrf.mxu2  ;;  %v569_v51 = vpop.f32.mrf.mxu3  ;;  %v349_v52 = vadd.f32 %v348_v28, %v347_v33  ;;  %v340_v55 = vadd.f32 %v339_v46, %v338_v32 }
 0x13a   :  { %v355_v60 = vrot.slane %v354_v47, 4  ;;  %v364_v61 = vrot.slane %v363_v48, 4  ;;  %v485_v38 = vpop.f32.mrf.mxu0  ;;  %v514_v42 = vpop.f32.mrf.mxu1  ;;  %v541_v30 = vadd.f32 %v540_v50, %v1005_v41  ;;  %v570_v32 = vadd.f32 %v569_v51, %v1005_v41 }
 0x13b   :  { %v350_v53 = vrot.slane %v349_v52, 1  ;;  %v341_v3 = vrot.slane %v340_v55, 1  ;;  %v486_v6 = vadd.f32 %v485_v38, %v1007_v10  ;;  %v515_v7 = vadd.f32 %v514_v42, %v1007_v10 }
 0x13c   :  { %v356_v57 = vadd.f32 %v355_v60, %v354_v47  ;;  %v365_v58 = vadd.f32 %v364_v61, %v363_v48  ;;  %v583_v59 = vmax.f32 %v541_v30, 0.0  ;;  %v584_v62 = vmax.f32 %v570_v32, 0.0 }
 0x13d   :  { %v351_v63 = vadd.f32 %v350_v53, %v349_v52  ;;  %v342_v13 = vadd.f32 %v341_v3, %v340_v55  ;;  %v585_v22 = vmax.f32 %v486_v6, 0.0  ;;  %v586_v23 = vmax.f32 %v515_v7, 0.0 }
 0x13e   :  { %v357_v0 = vrot.slane %v356_v57, 2  ;;  %v366_v1 = vrot.slane %v365_v58, 2 }
 0x13f   :  { %v376_v49 = vadd.f32 %v1055_v31, %v351_v63  ;;  %v375_v37 = vadd.f32 %v1055_v31, %v342_v13  ;;  %v601_v28 = vmul.f32 %v585_v22, %v1021_v36  ;;  %v602_v47 = vmul.f32 %v586_v23, %v1021_v36 }
 0x140   :  { %v358_v4 = vadd.f32 %v357_v0, %v356_v57  ;;  %v367_v34 = vadd.f32 %v366_v1, %v365_v58 }
 0x141   :  { %v543_v14 = vpop.f32.mrf.mxu2  ;;  %v572_v35 = vpop.f32.mrf.mxu3  ;;  %v383_v24 = vrot.slane %v376_v49, 7  ;;  %v622_v1 = vadd.f32 %v602_v47, %v598_v21 }
 0x142   :  { %v359_v56 = vrot.slane %v358_v4, 1  ;;  %v368_v54 = vrot.slane %v367_v34, 1  ;;  %v488_v9 = vpop.f32.mrf.mxu0  ;;  %v517_v11 = vpop.f32.mrf.mxu1  ;;  %v544_v39 = vadd.f32 %v543_v14, %v1007_v10  ;;  %v573_v40 = vadd.f32 %v572_v35, %v1007_v10 }
 0x143   :  { %v489_v45 = vadd.f32 %v488_v9, %v1013_v17  ;;  %v518_v12 = vadd.f32 %v517_v11, %v1013_v17  ;;  %v387_v60 = vsel %vm386_vm1, %v375_v37, %v383_v24 }
 0x144   :  { %v360_v18 = vadd.f32 %v359_v56, %v358_v4  ;;  %v369_v8 = vadd.f32 %v368_v54, %v367_v34  ;;  %v587_v63 = vmax.f32 %v544_v39, 0.0  ;;  %v588_v0 = vmax.f32 %v573_v40, 0.0 }
 0x145   :  { %v589_v25 = vmax.f32 %v489_v45, 0.0  ;;  %v590_v33 = vmax.f32 %v518_v12, 0.0  ;;  %v599_v56 = vmul.f32 %v583_v59, %v1011_v16  ;;  %v600_v54 = vmul.f32 %v584_v62, %v1011_v16 }
 0x146   :  { %v377_v26 = vadd.f32 %v1055_v31, %v360_v18  ;;  %v378_v27 = vadd.f32 %v1055_v31, %v369_v8  ;;  %v603_v35 = vmul.f32 %v587_v63, %v1021_v36  ;;  %v604_v49 = vmul.f32 %v588_v0, %v1021_v36 }
 0x147   :  { %v605_v41 = vmul.f32 %v589_v25, %v1027_v29  ;;  %v606_v55 = vmul.f32 %v590_v33, %v1027_v29 }
 0x148   :  { %v384_v44 = vrot.slane %v377_v26, 6  ;;  %v385_v46 = vrot.slane %v378_v27, 5  ;;  %v631_v22 = vadd.f32 %v603_v35, %v599_v56  ;;  %v640_v36 = vadd.f32 %v604_v49, %v600_v54 }
 0x149   :  { %v546_v48 = vpop.f32.mrf.mxu2  ;;  %v575_v52 = vpop.f32.mrf.mxu3  ;;  %v623_v6 = vadd.f32 %v622_v1, %v606_v55 }
 0x14a   :  { %v547_v51 = vadd.f32 %v546_v48, %v1013_v17  ;;  %v576_v10 = vadd.f32 %v575_v52, %v1013_v17  ;;  %v491_v61 = vpop.f32.mrf.mxu0  ;;  %v520_v38 = vpop.f32.mrf.mxu1  ;;  %v389_v42 = vsel %vm388_vm2, %v384_v44, %v385_v46  ;;  %v613_v17 = vadd.f32 %v601_v28, %v597_v19 }
 0x14b   :  { %v492_v53 = vadd.f32 %v491_v61, %v1009_v15  ;;  %v521_v57 = vadd.f32 %v520_v38, %v1009_v15  ;;  %v391_v58 = vsel %vm390_vm3, %v387_v60, %v389_v42 }
 0x14c   :  { %397 = vst.msk [vmem:[#allocation7] sm:$0xf] %vm1074_vm4, %v391_v58  ;;  %v591_v34 = vmax.f32 %v547_v51, 0.0  ;;  %v592_v5 = vmax.f32 %v576_v10, 0.0  ;;  %v614_v43 = vadd.f32 %v613_v17, %v605_v41 }
 0x14d   :  { %v593_v3 = vmax.f32 %v492_v53, 0.0  ;;  %v594_v4 = vmax.f32 %v521_v57, 0.0 }
 0x14e   :  { %v607_v13 = vmul.f32 %v591_v34, %v1027_v29  ;;  %v608_v18 = vmul.f32 %v592_v5, %v1027_v29 }
 0x14f   :  { %v609_v7 = vmul.f32 %v593_v3, %v1039_v2  ;;  %v610_v14 = vmul.f32 %v594_v4, %v1039_v2 }
 0x150   :  { %v632_v26 = vadd.f32 %v631_v22, %v607_v13  ;;  %v641_v27 = vadd.f32 %v640_v36, %v608_v18 }
 0x151   :  { %v615_v9 = vadd.f32 %v614_v43, %v609_v7  ;;  %v624_v11 = vadd.f32 %v623_v6, %v610_v14  ;;  %v549_v45 = vpop.f32.mrf.mxu2  ;;  %v578_v12 = vpop.f32.mrf.mxu3 }
 0x152   :  { %v550_v8 = vadd.f32 %v549_v45, %v1009_v15  ;;  %v579_v19 = vadd.f32 %v578_v12, %v1009_v15 }
 0x153   :  { %v616_v20 = vrot.slane %v615_v9, 4  ;;  %v625_v21 = vrot.slane %v624_v11, 4 }
 0x154   :  { %v595_v23 = vmax.f32 %v550_v8, 0.0  ;;  %v596_v24 = vmax.f32 %v579_v19, 0.0 }
 0x155   :  { %v617_v25 = vadd.f32 %v616_v20, %v615_v9  ;;  %v626_v16 = vadd.f32 %v625_v21, %v624_v11 }
 0x156   :  { %v611_v30 = vmul.f32 %v595_v23, %v1039_v2  ;;  %v612_v32 = vmul.f32 %v596_v24, %v1039_v2 }
 0x157   :  { %v627_v33 = vrot.slane %v626_v16, 2  ;;  %v618_v29 = vrot.slane %v617_v25, 2 }
 0x158   :  { %v633_v37 = vadd.f32 %v632_v26, %v611_v30  ;;  %v642_v39 = vadd.f32 %v641_v27, %v612_v32 }
 0x159   :  { %v628_v40 = vadd.f32 %v627_v33, %v626_v16  ;;  %v619_v28 = vadd.f32 %v618_v29, %v617_v25 }
 0x15a   :  { %v634_v15 = vrot.slane %v633_v37, 4  ;;  %v643_v44 = vrot.slane %v642_v39, 4 }
 0x15b   :  { %v629_v46 = vrot.slane %v628_v40, 1  ;;  %v620_v51 = vrot.slane %v619_v28, 1 }
 0x15c   :  { %v635_v47 = vadd.f32 %v634_v15, %v633_v37  ;;  %v644_v48 = vadd.f32 %v643_v44, %v642_v39 }
 0x15d   :  { %v630_v52 = vadd.f32 %v629_v46, %v628_v40  ;;  %v621_v55 = vadd.f32 %v620_v51, %v619_v28 }
 0x15e   :  { %v636_v60 = vrot.slane %v635_v47, 2  ;;  %v645_v41 = vrot.slane %v644_v48, 2 }
 0x15f   :  { %v650_v38 = vadd.f32 %v630_v52, %v1055_v31  ;;  %v649_v63 = vadd.f32 %v621_v55, %v1055_v31 }
 0x160   :  { %v637_v10 = vadd.f32 %v636_v60, %v635_v47  ;;  %v646_v61 = vadd.f32 %v645_v41, %v644_v48 }
 0x161   :  { %v657_v58 = vrot.slane %v650_v38, 7 }
 0x162   :  { %v638_v2 = vrot.slane %v637_v10, 1  ;;  %v647_v42 = vrot.slane %v646_v61, 1 }
 0x163   :  { %v660_v1 = vsel %vm386_vm1, %v649_v63, %v657_v58 }
 0x164   :  { %v639_v53 = vadd.f32 %v638_v2, %v637_v10  ;;  %v648_v57 = vadd.f32 %v647_v42, %v646_v61 }
 0x166   :  { %v651_v59 = vadd.f32 %v639_v53, %v1055_v31  ;;  %v652_v62 = vadd.f32 %v648_v57, %v1055_v31 }
 0x168   :  { %v658_v0 = vrot.slane %v651_v59, 6  ;;  %v659_v17 = vrot.slane %v652_v62, 5 }
 0x16a   :  { %v661_v3 = vsel %vm388_vm2, %v658_v0, %v659_v17 }
 0x16b   :  { %v662_v4 = vsel %vm390_vm3, %v660_v1, %v661_v3 }
 0x16c   :  { %665 = vst.msk [vmem:[#allocation7 + $0x4] sm:$0xf] %vm1074_vm4, %v662_v4 }
 0x16d   :  { %676 = dma.vmem_to_hbm [thread:$0]  %s672_s1, 128, %s674_s23, [#allocation4]  }
 0x16e   :  { %816 = dma.done.wait [#allocation4], 128  }
 0x16f   :  { %817 = vsyncadd [#allocation4], 4294967168 }
 0x170   :  { %681 = vsyncpa [#allocation3], 1 }
 0x171   :  { %682 = vsyncpa [#allocation6], 1 }
 0x172   :  { %683 = vsyncpa [#allocation4], 1 }

</bundles_post_ra>
